<compile_context>
chip_gen: v7x
topology: tpu7x:2x2x1
jax: 0.10.0
libtpu: 0.0.40
codegen_flags: <defaults>
</compile_context>

<pallas_src>
import jax
import jax.numpy as jnp
from jax.experimental import pallas as pl
from jax.experimental.pallas import tpu as pltpu

IN_DIM = 10
HID_DIM = 10
OUT_DIM = 5


def toy_model_kernel(x_ref, w1_ref, b1_ref, w2_ref, b2_ref, o_ref):
    # Feature-major: batch on lanes.
    # x_ref : (IN_DIM,  TILE_B)   current batch tile in VMEM
    # w1_ref: (HID_DIM, IN_DIM)   PyTorch (out, in) layout — resident
    # b1_ref: (HID_DIM, 1)
    # w2_ref: (OUT_DIM, HID_DIM)  resident
    # b2_ref: (OUT_DIM, 1)
    # o_ref : (OUT_DIM, TILE_B)
    x = x_ref[...]
    h = jnp.dot(w1_ref[...], x, preferred_element_type=jnp.float32) + b1_ref[...]
    h = jnp.maximum(h, 0.0)
    y = jnp.dot(w2_ref[...], h, preferred_element_type=jnp.float32) + b2_ref[...]
    o_ref[...] = y.astype(o_ref.dtype)


def _round_up(n, m):
    return ((n + m - 1) // m) * m


def prepare_params(w1, b1, w2, b2):
    """One-time parameter prep (hoisted out of the per-call forward path).

    PyTorch-layout params (w: (out, in), b: (out,)) -> kernel layout:
    weights stay (out, in); biases become (out, 1) column vectors.
    """
    return (
        jnp.asarray(w1, jnp.float32),                  # (10, 10)
        jnp.asarray(b1, jnp.float32).reshape(-1, 1),   # (10, 1)
        jnp.asarray(w2, jnp.float32),                  # (5, 10)
        jnp.asarray(b2, jnp.float32).reshape(-1, 1),   # (5, 1)
    )


def _pick_tile(batch, tile_b):
    """Pick a lane-tile size (multiple of 128, or == batch) and the grid size."""
    if batch <= 256:
        # Single block; block last-dim == full array dim is always legal.
        return batch, 1
    # Keep at least 2 grid steps so v7x's two TensorCores both get work.
    tb = min(tile_b, _round_up(pl.cdiv(batch, 2), 128))
    tb = max(tb, 128)
    return tb, pl.cdiv(batch, tb)


def _vmem_limit_bytes(tb):
    # Feature-major f32 tiles (sublane-padded): x ~16 rows, hidden ~16, out ~8.
    # x/out are double-buffered by the pipeline; hidden is a kernel temporary.
    est = 2 * (16 + 8) * tb * 4 + 16 * tb * 4 + (2 << 20)  # + headroom
    return int(min(48 << 20, max(8 << 20, est)))


def toy_model_forward(x_fm, prepared_params, *, tile_b=16384):
    """Fused forward.

    x_fm: feature-major input, shape (IN_DIM, B) f32 — the layout change should
    happen at the data producer (it costs zero extra HBM bytes there).
    Returns feature-major output of shape (OUT_DIM, B).
    """
    w1, b1, w2, b2 = prepared_params
    _, B = x_fm.shape

    tb, steps = _pick_tile(B, tile_b)
    grid = (steps,)

    cost = pl.CostEstimate(
        flops=2 * B * (IN_DIM * HID_DIM + HID_DIM * OUT_DIM),
        transcendentals=0,
        bytes_accessed=4 * (B * IN_DIM + B * OUT_DIM
                            + IN_DIM * HID_DIM + HID_DIM * OUT_DIM
                            + HID_DIM + OUT_DIM),
    )

    out = pl.pallas_call(
        toy_model_kernel,
        out_shape=jax.ShapeDtypeStruct((OUT_DIM, B), jnp.float32),
        grid=grid,
        in_specs=[
            pl.BlockSpec((IN_DIM, tb), lambda i: (0, i)),         # x: tiled over batch (lanes)
            pl.BlockSpec((HID_DIM, IN_DIM), lambda i: (0, 0)),    # w1: resident
            pl.BlockSpec((HID_DIM, 1), lambda i: (0, 0)),         # b1: resident
            pl.BlockSpec((OUT_DIM, HID_DIM), lambda i: (0, 0)),   # w2: resident
            pl.BlockSpec((OUT_DIM, 1), lambda i: (0, 0)),         # b2: resident
        ],
        out_specs=pl.BlockSpec((OUT_DIM, tb), lambda i: (0, i)),
        compiler_params=pltpu.CompilerParams(
            dimension_semantics=("parallel",),        # v7x: shard batch across both TCs
            vmem_limit_bytes=_vmem_limit_bytes(tb),
        ),
        cost_estimate=cost,
    )(x_fm, w1, b1, w2, b2)

    return out  # (OUT_DIM, B), feature-major


def init_params(key):
    """nn.Linear-style init: U(-1/sqrt(fan_in), 1/sqrt(fan_in)), PyTorch (out, in) layout."""
    k1, k2, k3, k4 = jax.random.split(key, 4)
    bound1 = 1.0 / jnp.sqrt(float(IN_DIM))
    w1 = jax.random.uniform(k1, (HID_DIM, IN_DIM), jnp.float32, -bound1, bound1)
    b1 = jax.random.uniform(k2, (HID_DIM,), jnp.float32, -bound1, bound1)
    bound2 = 1.0 / jnp.sqrt(float(HID_DIM))
    w2 = jax.random.uniform(k3, (OUT_DIM, HID_DIM), jnp.float32, -bound2, bound2)
    b2 = jax.random.uniform(k4, (OUT_DIM,), jnp.float32, -bound2, bound2)
    return w1, b1, w2, b2


def _reference(x, w1, b1, w2, b2):
    # Same math as the PyTorch forward (batch-major).
    return jnp.maximum(x @ w1.T + b1, 0.0) @ w2.T + b2


if __name__ == "__main__":
    key = jax.random.PRNGKey(0)
    k_x, k_p = jax.random.split(key)

    w1, b1, w2, b2 = init_params(k_p)
    params = prepare_params(w1, b1, w2, b2)  # one-time prep

    # --- small demo batch (single block; block last-dim == full batch) ---
    B = 8
    x = jax.random.normal(k_x, (B, IN_DIM), jnp.float32)   # PyTorch-layout input
    x_fm = x.T                                              # producer-side layout change
    out_fm = jax.block_until_ready(toy_model_forward(x_fm, params))
    assert out_fm.shape == (OUT_DIM, B)
    ref = _reference(x, w1, b1, w2, b2)
    assert jnp.allclose(out_fm.T, ref, atol=1e-5, rtol=1e-5)

    # --- larger batch that is NOT a multiple of the tile (exercises the masked
    #     partial final block, no jnp.pad / no output slice copies) ---
    B2 = 1030
    x2 = jax.random.normal(jax.random.PRNGKey(1), (B2, IN_DIM), jnp.float32)
    out2_fm = jax.block_until_ready(toy_model_forward(x2.T, params))
    assert out2_fm.shape == (OUT_DIM, B2)
    ref2 = _reference(x2, w1, b1, w2, b2)
    assert jnp.allclose(out2_fm.T, ref2, atol=1e-5, rtol=1e-5)

    print("KERNEL_OK")
</pallas_src>

<mosaic_0001>
module attributes {stable_mosaic.version = 11 : i64} {
  func.func @toy_model_kernel(%arg0: i32, %arg1: memref<10x8xf32, #tpu.memory_space<vmem>>, %arg2: memref<10x10xf32, #tpu.memory_space<vmem>>, %arg3: memref<10x1xf32, #tpu.memory_space<vmem>>, %arg4: memref<5x10xf32, #tpu.memory_space<vmem>>, %arg5: memref<5x1xf32, #tpu.memory_space<vmem>>, %arg6: memref<5x8xf32, #tpu.memory_space<vmem>>) attributes {dimension_semantics = [#tpu.dimension_semantics<parallel>], iteration_bounds = array<i64: 1>, scalar_prefetch = 0 : i64, scratch_operands = 0 : i64, tpu.core_type = #tpu.core_type<tc>, window_params = [{transform_indices = @transform_0, window_bounds = array<i64: 10, 8>}, {pipeline_mode = #tpu.pipeline_mode<synchronous>, transform_indices = @transform_1, window_bounds = array<i64: 10, 10>}, {pipeline_mode = #tpu.pipeline_mode<synchronous>, transform_indices = @transform_2, window_bounds = array<i64: 10, 1>}, {pipeline_mode = #tpu.pipeline_mode<synchronous>, transform_indices = @transform_3, window_bounds = array<i64: 5, 10>}, {pipeline_mode = #tpu.pipeline_mode<synchronous>, transform_indices = @transform_4, window_bounds = array<i64: 5, 1>}, {transform_indices = @transform_5, window_bounds = array<i64: 5, 8>}]} {
    %c0 = arith.constant 0 : index
    %c0_0 = arith.constant 0 : index
    %0 = vector.load %arg1[%c0, %c0_0] : memref<10x8xf32, #tpu.memory_space<vmem>>, vector<10x8xf32>
    %c0_1 = arith.constant 0 : index
    %c0_2 = arith.constant 0 : index
    %1 = vector.load %arg2[%c0_1, %c0_2] : memref<10x10xf32, #tpu.memory_space<vmem>>, vector<10x10xf32>
    %cst = arith.constant dense<0.000000e+00> : vector<10x8xf32>
    %2 = tpu.matmul %1, %0, %cst {dimension_numbers = #tpu.dot_dimension_numbers<[1], [0], [0], [1], [0, 0, 1, 1], [], []>} : vector<10x10xf32>, vector<10x8xf32>, vector<10x8xf32> -> vector<10x8xf32>
    %c0_3 = arith.constant 0 : index
    %c0_4 = arith.constant 0 : index
    %3 = vector.load %arg3[%c0_3, %c0_4] : memref<10x1xf32, #tpu.memory_space<vmem>>, vector<10x1xf32>
    %4 = vector.broadcast %3 : vector<10x1xf32> to vector<10x8xf32>
    %5 = arith.addf %2, %4 : vector<10x8xf32>
    %cst_5 = arith.constant 0.000000e+00 : f32
    %6 = vector.broadcast %cst_5 : f32 to vector<10x8xf32>
    %7 = arith.maximumf %5, %6 : vector<10x8xf32>
    %c0_6 = arith.constant 0 : index
    %c0_7 = arith.constant 0 : index
    %8 = vector.load %arg4[%c0_6, %c0_7] : memref<5x10xf32, #tpu.memory_space<vmem>>, vector<5x10xf32>
    %cst_8 = arith.constant dense<0.000000e+00> : vector<5x8xf32>
    %9 = tpu.matmul %8, %7, %cst_8 {dimension_numbers = #tpu.dot_dimension_numbers<[1], [0], [0], [1], [0, 0, 1, 1], [], []>} : vector<5x10xf32>, vector<10x8xf32>, vector<5x8xf32> -> vector<5x8xf32>
    %c0_9 = arith.constant 0 : index
    %c0_10 = arith.constant 0 : index
    %10 = vector.load %arg5[%c0_9, %c0_10] : memref<5x1xf32, #tpu.memory_space<vmem>>, vector<5x1xf32>
    %11 = vector.broadcast %10 : vector<5x1xf32> to vector<5x8xf32>
    %12 = arith.addf %9, %11 : vector<5x8xf32>
    %c0_11 = arith.constant 0 : index
    %c0_12 = arith.constant 0 : index
    %13 = vector.load %arg6[%c0_11, %c0_12] : memref<5x8xf32, #tpu.memory_space<vmem>>, vector<5x8xf32>
    tpu.vector_store %arg6[%c0_11, %c0_12], %12 {strides = array<i32>} : memref<5x8xf32, #tpu.memory_space<vmem>>, vector<5x8xf32>,
    return
  }
  func.func @transform_0(%arg0: i32) -> (i32, i32) {
    %c0_i32 = arith.constant 0 : i32
    %c0_i32_0 = arith.constant 0 : i32
    return %c0_i32, %arg0 : i32, i32
  }
  func.func @transform_1(%arg0: i32) -> (i32, i32) {
    %c0_i32 = arith.constant 0 : i32
    %c0_i32_0 = arith.constant 0 : i32
    %c0_i32_1 = arith.constant 0 : i32
    return %c0_i32, %c0_i32_0 : i32, i32
  }
  func.func @transform_2(%arg0: i32) -> (i32, i32) {
    %c0_i32 = arith.constant 0 : i32
    %c0_i32_0 = arith.constant 0 : i32
    %c0_i32_1 = arith.constant 0 : i32
    return %c0_i32, %c0_i32_0 : i32, i32
  }
  func.func @transform_3(%arg0: i32) -> (i32, i32) {
    %c0_i32 = arith.constant 0 : i32
    %c0_i32_0 = arith.constant 0 : i32
    %c0_i32_1 = arith.constant 0 : i32
    return %c0_i32, %c0_i32_0 : i32, i32
  }
  func.func @transform_4(%arg0: i32) -> (i32, i32) {
    %c0_i32 = arith.constant 0 : i32
    %c0_i32_0 = arith.constant 0 : i32
    %c0_i32_1 = arith.constant 0 : i32
    return %c0_i32, %c0_i32_0 : i32, i32
  }
  func.func @transform_5(%arg0: i32) -> (i32, i32) {
    %c0_i32 = arith.constant 0 : i32
    %c0_i32_0 = arith.constant 0 : i32
    return %c0_i32, %arg0 : i32, i32
  }
}

</mosaic_0001>

<bundles_post_ra>
// kernel: tpu_custom_call.1
= control target key start
LH: loop header
LB: loop body
LE: loop exit
PB: predicated region body
PF: predicated region fallthrough
CT: control target
= control target key end

     0   :  { %vm44_vm0 = vcmask 1041408   ;;  %vm292_vm1 = vmmov 1   ;;  %vm37_vm3 = vcmask 80896   ;;  %v293_v6 = vmov 0   ;;  %s377_s0 = inlined_call_operand.vmem [shape: f32[10,8], index: 0, kind: input, shape index: {}]   ;;  %s378_s1 = inlined_call_operand.vmem [shape: f32[10,10], index: 1, kind: input, shape index: {}]   ;;  %s379_s2 = inlined_call_operand.vmem [shape: f32[10,1], index: 2, kind: input, shape index: {}]   ;;  %s380_s3 = inlined_call_operand.vmem [shape: f32[5,10], index: 3, kind: input, shape index: {}]   ;;  %s381_s4 = inlined_call_operand.vmem [shape: f32[5,1], index: 4, kind: input, shape index: {}]   ;;  %s382_s5 = inlined_call_operand.hbm [shape: f32[5,8], index: 5, kind: output, shape index: {}]  }
   0x1   :  { %v21_v0 = vld [vmem:[%s377_s0] sm:$0xff]  ;;  %v22_v1 = vld [vmem:[%s377_s0 + $0x8] sm:$0x3]  ;;  %vm337_vm2 = vmpackc.low %vm44_vm0, %vm292_vm1  ;;  %266 = vset.pattern.permute.xlu0 %v293_v6 }
   0x2   :  { %v23_v2 = vld [vmem:[%s378_s1] sm:$0xff]  ;;  %v250_v3 = vpack.c.bf16 %v22_v1, %v21_v0 }
   0x3   :  { %v25_v5 = vld [vmem:[%s379_s2] sm:$0xff]  ;;  %240 = vmatprep.mubr.msk.f32.mxu0 %vm37_vm3, %v23_v2 }
   0x4   :  { %10 = vsyncpa [#allocation3], 0  ;;  %252 = vmatprep.subr.msk.bf16.mxu0 %vm337_vm2, %v250_v3  ;;  %29 = vperm.xlu0 %266, %v25_v5   ;;  %v24_v7 = vld [vmem:[%s378_s1 + $0x8] sm:$0x3]  ;;  %v294_v9 = vmov 0.0|0.0   ;;  %vm295_vm4 = vmmov 0  }
   0x5   :  { %255 = vmatpush3.bf16.msk.msra.mxu0 %vm337_vm2, %v250_v3  ;;  %v26_v8 = vld [vmem:[%s379_s2 + $0x8] sm:$0x3]  ;;  %267 = vset.pattern.permute.xlu1 %v293_v6  ;;  %v296_v10 = vmov 0.0   ;;  %v126_v11 = vld [vmem:[%s381_s4] sm:$0x1f]  ;;  %s297_s4 = smov [#allocation2]  }
   0x6   :  { %256 = vmatprep.subr.bf16.mxu1 %v294_v9  ;;  %247 = vmatprep.mubr.msk.f32.mxu1 %vm295_vm4, %v296_v10  ;;  %v125_v21 = vld [vmem:[%s380_s3] sm:$0x1f]  ;;  %s216_s6 = sshll.u32 %s297_s4, 4  ;;  %vm208_vm5 = vcmask 61440   ;;  %s217_s6 = int_to_ptr.vmem [resolvable:$true] %s216_s6 }
   0x7   :  { %129 = vperm.xlu1 %267, %v126_v11   ;;  %s268_s7 = scalar_lea.vmem %s217_s6, 128  ;;  %p273_p1 = scmp.lt.s32.totalorder %s217_s6, %s217_s6 }
   0x8   :  { %241 = vmatmul.mubr.msk.f32.vlgmr.msra.gmra.mrb[0].mxu0 %vm37_vm3, %v24_v7  ;;  %34 = vperm.xlu0 %266, %v26_v8   ;;  %p269_p0 = scmp.ne.s32.totalorder %s217_s6, %s268_s7  ;;  %p274_p2 = scmp.lt.s32.totalorder %s268_s7, %s268_s7 }
   0xa   :  { %p275_p3 = por %p274_p2, %p273_p1 }
   0xc   :  { %p276_p4 = pnand %p275_p3, %p269_p0 }
  0x83   :  { %v30_v12 = vpop.permute.xlu0 %29 }
  0x86   :  { %v130_v22 = vpop.permute.xlu1 %129 }
  0x87   :  { %v35_v13 = vpop.permute.xlu0 %34 }
  0xdb   :  { %v242_v14 = vpop.f32.mrb[0].mxu0 }
  0xdc   :  { %v120_v15 = vadd.f32 %v242_v14, %v35_v13  ;;  %v114_v16 = vpop.f32.mrb[1].mxu0 }
  0xdd   :  { %v115_v17 = vadd.f32 %v114_v16, %v30_v12 }
  0xde   :  { %v124_v18 = vmax.f32 %v120_v15, 0.0 }
  0xdf   :  { %v123_v19 = vmax.f32 %v115_v17, 0.0 }
  0xe1   :  { %v257_v20 = vpack.c.bf16 %v124_v18, %v123_v19 }
  0xe3   :  { %259 = vmatpush3.bf16.msk.msra.mxu1 %vm337_vm2, %v257_v20 }
  0xe6   :  { %248 = vmatmul.mubr.msk.f32.vlgmr.msra.gmra.mrb[0].mxu1 %vm37_vm3, %v125_v21 }
 0x1b9   :  { %v204_v23 = vpop.f32.mrb[0].mxu1 }
 0x1ba   :  { %v205_v24 = vadd.f32 %v204_v23, %v130_v22  ;;  %v249_v25 = vpop.f32.mrb[1].mxu1 }
 0x1bc   :  { %209 = vst.msk [vmem:[#allocation2] sm:$0x1f] %vm208_vm5, %v205_v24 }
 0x1bd   :  { %279 = shalt.err (!%p276_p4)
}
 0x1be   :  { %s280_s9 = scalar_lea.hbm %s382_s5, 128 }
 0x1bf   :  { %p281_p5 = scmp.ne.s32.totalorder %s382_s5, %s280_s9  ;;  %p284_p6 = scmp.lt.u32.totalorder %s280_s9, %s382_s5 }
 0x1c1   :  { %p286_p7 = pnand %p284_p6, %p281_p5 }
 0x1c3   :  { %289 = shalt.err (!%p286_p7)
}
 0x1c4   :  { %219 = dma.vmem_to_hbm [thread:$0]  %s217_s6, 128, %s382_s5, [#allocation3]  }
 0x1c5   :  { %290 = dma.done.wait [#allocation3], 128  }
 0x1c6   :  { %291 = vsyncadd [#allocation3], 4294967168 }
 0x1c7   :  { %223 = vsyncpa [#allocation3], 1 }

</bundles_post_ra>
